<compile_context>
chip_gen: v7x
topology: tpu7x:2x2x1
jax: 0.10.0
libtpu: 0.0.40
codegen_flags: <defaults>
</compile_context>

<pallas_src>
import functools
import math

import numpy as np
import jax
import jax.numpy as jnp
from jax.experimental import pallas as pl
from jax.experimental.pallas import tpu as pltpu


def _sinusoidal_kernel(*refs, use_onehot):
    if use_onehot:
        x_ref, tab_ref, onehot_ref, out_ref = refs
        # Scatter each of the `pack` timesteps in a row into its own dim-wide lane
        # band with a tiny one-hot matmul. The MXU is otherwise idle here, so this
        # rides the free vector-extended slot instead of burning VPU slots.
        xfull = jnp.dot(x_ref[...], onehot_ref[...],
                        preferred_element_type=jnp.float32)
    else:
        x_ref, tab_ref, out_ref = refs
        xfull = jnp.broadcast_to(x_ref[...], out_ref.shape)

    freq = tab_ref[0:1, :]    # (1, lanes)  per-lane frequency (trace-time constant)
    phase = tab_ref[1:2, :]   # (1, lanes)  0 for sin lanes, pi/2 for cos lanes
    # cos(a) == sin(a + pi/2): one EUP transcendental per output element,
    # single lane-dense store of the whole tile.
    out_ref[...] = jnp.sin(xfull * freq + phase).astype(out_ref.dtype)


def _round_up(a, m):
    return ((a + m - 1) // m) * m


def sinusoidal_pos_emb(x, dim, *, block_rows=1024, out_dtype=jnp.float32):
    """x: (B,) positions/timesteps. Returns (B, dim) matching
    torch.cat((emb.sin(), emb.cos()), dim=-1) of the PyTorch module."""
    assert dim % 2 == 0 and dim >= 4, "dim must be even and >= 4"
    b = x.shape[0]
    half = dim // 2
    scale = math.log(10000.0) / (half - 1)

    # Lane packing: present the output as (rows, pack*dim) with pack*dim a multiple
    # of 128 whenever possible, so stores are unmasked full-width vst.
    lcm = math.lcm(dim, 128)
    if lcm <= 512:
        lanes, pack = lcm, lcm // dim
    else:
        # TODO(synk): dims with lcm(dim, 128) > 512 fall back to lane-sparse stores.
        lanes, pack = dim, 1

    # Trace-time per-lane constant table (freq row + phase row).
    k = np.arange(lanes) % dim
    kk = np.where(k < half, k, k - half).astype(np.float64)
    freq_np = np.exp(-scale * kk)
    phase_np = np.where(k < half, 0.0, 0.5 * math.pi)
    tab = jnp.asarray(np.stack([freq_np, phase_np]), dtype=jnp.float32)  # (2, lanes)

    # Row tiling; sublane granularity depends on output itemsize (f32:8, bf16:16, 8-bit:32).
    itemsize = jnp.dtype(out_dtype).itemsize
    sub = {4: 8, 2: 16, 1: 32}.get(itemsize, 8)
    rows = -(-b // pack)
    if rows <= 64:
        tb = rows                                    # single full-extent block
    else:
        # >= 2 grid blocks (v7x megacore sharding), each at most block_rows rows.
        tb = min(_round_up(block_rows, sub), _round_up(-(-rows // 2), sub))
    rows_padded = _round_up(rows, tb)
    b_padded = rows_padded * pack

    xp = x.astype(jnp.float32)
    if b_padded != b:
        xp = jnp.pad(xp, (0, b_padded - b))
    x2d = xp.reshape(rows_padded, pack)

    in_specs = [
        pl.BlockSpec((tb, pack), lambda i: (i, 0)),
        pl.BlockSpec((2, lanes), lambda i: (0, 0)),
    ]
    args = [x2d, tab]
    use_onehot = pack > 1
    if use_onehot:
        g = np.arange(lanes) // dim
        onehot = jnp.asarray(
            (g[None, :] == np.arange(pack)[:, None]).astype(np.float32))  # (pack, lanes)
        in_specs.append(pl.BlockSpec((pack, lanes), lambda i: (0, 0)))
        args.append(onehot)

    out = pl.pallas_call(
        functools.partial(_sinusoidal_kernel, use_onehot=use_onehot),
        out_shape=jax.ShapeDtypeStruct((rows_padded, lanes), out_dtype),
        grid=(rows_padded // tb,),
        in_specs=in_specs,
        out_specs=pl.BlockSpec((tb, lanes), lambda i: (i, 0)),
        compiler_params=pltpu.CompilerParams(dimension_semantics=("parallel",)),
    )(*args)

    return out.reshape(b_padded, dim)[:b]


def _reference(x, dim):
    half_dim = dim // 2
    scale = math.log(10000.0) / (half_dim - 1)
    freqs = jnp.exp(jnp.arange(half_dim, dtype=jnp.float32) * -scale)
    emb = x.astype(jnp.float32)[:, None] * freqs[None, :]
    return jnp.concatenate((jnp.sin(emb), jnp.cos(emb)), axis=-1)


if __name__ == "__main__":
    key = jax.random.PRNGKey(0)

    # 1) Typical small use: B timesteps, small embedding dim (pack=4, lanes=128).
    B, DIM = 8, 32
    x = jax.random.uniform(key, (B,), dtype=jnp.float32) * 100.0
    out = jax.block_until_ready(sinusoidal_pos_emb(x, DIM))
    ref = _reference(x, DIM)
    assert out.shape == (B, DIM)
    assert jnp.allclose(out, ref, atol=1e-4, rtol=1e-4)

    # 2) Ragged batch, pack=2 path (padding / reshape plumbing).
    B2, DIM2 = 37, 64
    x2 = jax.random.uniform(jax.random.PRNGKey(1), (B2,), dtype=jnp.float32) * 50.0
    out2 = jax.block_until_ready(sinusoidal_pos_emb(x2, DIM2))
    ref2 = _reference(x2, DIM2)
    assert out2.shape == (B2, DIM2)
    assert jnp.allclose(out2, ref2, atol=1e-4, rtol=1e-4)

    # 3) dim not dividing 128 (lcm packing: lanes=384, pack=8) + multi-block grid.
    B3, DIM3 = 600, 48
    x3 = jax.random.uniform(jax.random.PRNGKey(2), (B3,), dtype=jnp.float32) * 100.0
    out3 = jax.block_until_ready(sinusoidal_pos_emb(x3, DIM3))
    ref3 = _reference(x3, DIM3)
    assert out3.shape == (B3, DIM3)
    assert jnp.allclose(out3, ref3, atol=1e-4, rtol=1e-4)

    # 4) Large timestep values (range-reduction check for the sin(a + pi/2) fold).
    B4, DIM4 = 16, 32
    x4 = jax.random.uniform(jax.random.PRNGKey(3), (B4,), dtype=jnp.float32) * 1000.0
    out4 = jax.block_until_ready(sinusoidal_pos_emb(x4, DIM4))
    ref4 = _reference(x4, DIM4)
    assert jnp.allclose(out4, ref4, atol=1e-3, rtol=1e-3)

    # 5) bf16 output path (halves HBM writeback when the consumer MLP is bf16).
    B5, DIM5 = 64, 128
    x5 = jax.random.uniform(jax.random.PRNGKey(4), (B5,), dtype=jnp.float32) * 100.0
    out5 = jax.block_until_ready(sinusoidal_pos_emb(x5, DIM5, out_dtype=jnp.bfloat16))
    ref5 = _reference(x5, DIM5)
    assert out5.shape == (B5, DIM5)
    assert jnp.allclose(out5.astype(jnp.float32), ref5, atol=2e-2, rtol=2e-2)

    print("KERNEL_OK")
</pallas_src>

<mosaic_0001>
module attributes {stable_mosaic.version = 11 : i64} {
  func.func @_sinusoidal_kernel(%arg0: i32, %arg1: memref<2x4xf32, #tpu.memory_space<vmem>>, %arg2: memref<2x128xf32, #tpu.memory_space<vmem>>, %arg3: memref<4x128xf32, #tpu.memory_space<vmem>>, %arg4: memref<2x128xf32, #tpu.memory_space<vmem>>) attributes {dimension_semantics = [#tpu.dimension_semantics<parallel>], iteration_bounds = array<i64: 1>, scalar_prefetch = 0 : i64, scratch_operands = 0 : i64, tpu.core_type = #tpu.core_type<tc>, window_params = [{transform_indices = @transform_0, window_bounds = array<i64: 2, 4>}, {pipeline_mode = #tpu.pipeline_mode<synchronous>, transform_indices = @transform_1, window_bounds = array<i64: 2, 128>}, {pipeline_mode = #tpu.pipeline_mode<synchronous>, transform_indices = @transform_2, window_bounds = array<i64: 4, 128>}, {transform_indices = @transform_3, window_bounds = array<i64: 2, 128>}]} {
    %c0 = arith.constant 0 : index
    %c0_0 = arith.constant 0 : index
    %0 = vector.load %arg1[%c0, %c0_0] : memref<2x4xf32, #tpu.memory_space<vmem>>, vector<2x4xf32>
    %c0_1 = arith.constant 0 : index
    %c0_2 = arith.constant 0 : index
    %1 = vector.load %arg3[%c0_1, %c0_2] : memref<4x128xf32, #tpu.memory_space<vmem>>, vector<4x128xf32>
    %cst = arith.constant dense<0.000000e+00> : vector<2x128xf32>
    %2 = tpu.matmul %0, %1, %cst {dimension_numbers = #tpu.dot_dimension_numbers<[1], [0], [0], [1], [0, 0, 1, 1], [], []>} : vector<2x4xf32>, vector<4x128xf32>, vector<2x128xf32> -> vector<2x128xf32>
    %c0_3 = arith.constant 0 : index
    %c0_4 = arith.constant 0 : index
    %3 = vector.load %arg2[%c0_3, %c0_4] : memref<2x128xf32, #tpu.memory_space<vmem>>, vector<1x128xf32>
    %c1 = arith.constant 1 : index
    %c0_5 = arith.constant 0 : index
    %4 = vector.load %arg2[%c1, %c0_5] : memref<2x128xf32, #tpu.memory_space<vmem>>, vector<1x128xf32>
    %5 = vector.broadcast %3 : vector<1x128xf32> to vector<2x128xf32>
    %6 = arith.mulf %2, %5 : vector<2x128xf32>
    %7 = vector.broadcast %4 : vector<1x128xf32> to vector<2x128xf32>
    %8 = arith.addf %6, %7 : vector<2x128xf32>
    %9 = math.sin %8 : vector<2x128xf32>
    %c0_6 = arith.constant 0 : index
    %c0_7 = arith.constant 0 : index
    %10 = vector.load %arg4[%c0_6, %c0_7] : memref<2x128xf32, #tpu.memory_space<vmem>>, vector<2x128xf32>
    tpu.vector_store %arg4[%c0_6, %c0_7], %9 {strides = array<i32>} : memref<2x128xf32, #tpu.memory_space<vmem>>, vector<2x128xf32>,
    return
  }
  func.func @transform_0(%arg0: i32) -> (i32, i32) {
    %c0_i32 = arith.constant 0 : i32
    %c0_i32_0 = arith.constant 0 : i32
    return %arg0, %c0_i32 : i32, i32
  }
  func.func @transform_1(%arg0: i32) -> (i32, i32) {
    %c0_i32 = arith.constant 0 : i32
    %c0_i32_0 = arith.constant 0 : i32
    %c0_i32_1 = arith.constant 0 : i32
    return %c0_i32, %c0_i32_0 : i32, i32
  }
  func.func @transform_2(%arg0: i32) -> (i32, i32) {
    %c0_i32 = arith.constant 0 : i32
    %c0_i32_0 = arith.constant 0 : i32
    %c0_i32_1 = arith.constant 0 : i32
    return %c0_i32, %c0_i32_0 : i32, i32
  }
  func.func @transform_3(%arg0: i32) -> (i32, i32) {
    %c0_i32 = arith.constant 0 : i32
    %c0_i32_0 = arith.constant 0 : i32
    return %arg0, %c0_i32 : i32, i32
  }
}

</mosaic_0001>

<bundles_post_ra>
// kernel: tpu_custom_call.1
= control target key start
LH: loop header
LB: loop body
LE: loop exit
PB: predicated region body
PF: predicated region fallthrough
CT: control target
= control target key end

     0   :  { %8 = vsyncpa [#allocation3], 0  ;;  %s404_s0 = inlined_call_operand.hbm [shape: f32[2,4], index: 0, kind: input, shape index: {}]   ;;  %s405_s1 = inlined_call_operand.vmem [shape: f32[2,128], index: 1, kind: input, shape index: {}]   ;;  %s406_s2 = inlined_call_operand.vmem [shape: f32[4,128], index: 2, kind: input, shape index: {}]   ;;  %s407_s3 = inlined_call_operand.hbm [shape: f32[2,128], index: 3, kind: output, shape index: {}]  }
   0x1   :  { %9 = vsyncpa [#allocation4], 0  ;;  %s320_s12 = smov [#allocation2]   ;;  %s272_s16 = scalar_lea.hbm %s404_s0, 32 }
   0x2   :  { %s16_s13 = sshll.u32 %s320_s12, 4  ;;  %p273_p0 = scmp.ne.s32.totalorder %s404_s0, %s272_s16  ;;  %s17_s13 = int_to_ptr.vmem [resolvable:$true] %s16_s13 }
   0x3   :  { %p276_p1 = scmp.lt.u32.totalorder %s272_s16, %s404_s0 }
   0x5   :  { %p278_p2 = pnand %p276_p1, %p273_p0 }
   0x7   :  { %281 = shalt.err (!%p278_p2)
}
   0x8   :  { %s282_s21 = scalar_lea.vmem %s17_s13, 32  ;;  %p287_p4 = scmp.lt.s32.totalorder %s17_s13, %s17_s13 }
   0x9   :  { %p283_p3 = scmp.ne.s32.totalorder %s17_s13, %s282_s21  ;;  %p288_p5 = scmp.lt.s32.totalorder %s282_s21, %s282_s21 }
   0xb   :  { %p289_p6 = por %p288_p5, %p287_p4 }
   0xd   :  { %p290_p7 = pnand %p289_p6, %p283_p3 }
   0xf   :  { %293 = shalt.err (!%p290_p7)
}
  0x10   :  { %19 = dma.hbm_to_vmem [thread:$0]  %s404_s0, 32, %s17_s13, [#allocation3]  }
  0x11   :  { %316 = dma.done.wait [#allocation3], 32  }
  0x12   :  { %317 = vsyncadd [#allocation3], 4294967264  ;;  %v321_v0 = vmov 0.0   ;;  %vm322_vm0 = vmmov 0   ;;  %vm33_vm1 = vcmask 1043456   ;;  %vm29_vm2 = vcmask 31744  }
  0x13   :  { %249 = vmatprep.subr.mxu0 %v321_v0  ;;  %251 = vmatprep.mubr.msk.f32.mxu0 %vm322_vm0, %v321_v0  ;;  %v28_v1 = vld [vmem:[%s406_s2] sm:$0xf]  ;;  %v27_v2 = vld [vmem:[#allocation2] sm:$0x3]  ;;  %v323_v20 = vmov 2102212464  }
  0x14   :  { %250 = vmatpush3.msk.msra.mxu0 %vm33_vm1, %v28_v1  ;;  %v241_v3 = vld [vmem:[%s405_s1] ss:$0 sm:$0xff]  ;;  %v242_v5 = vld [vmem:[%s405_s1 + $0x1] ss:$0 sm:$0xff]  ;;  %v324_v22 = vmov 920167782  }
  0x15   :  { %252 = vmatmul.mubr.msk.f32.vlgmr.msra.gmra.mrb[0].mxu0 %vm29_vm2, %v27_v2  ;;  %v325_v26 = vmov 1326507024   ;;  %v326_v28 = vmov 683565275   ;;  %v327_v30 = vmov 2475754826  }
  0x16   :  { %v328_v33 = vmov 2131351028   ;;  %s329_s1 = smov [#allocation5]  }
  0x17   :  { %s230_s2 = sshll.u32 %s329_s1, 4  ;;  %s231_s2 = int_to_ptr.vmem [resolvable:$true] %s230_s2 }
  0x18   :  { %s294_s29 = scalar_lea.vmem %s231_s2, 32  ;;  %p299_p9 = scmp.lt.s32.totalorder %s231_s2, %s231_s2 }
  0x19   :  { %p295_p8 = scmp.ne.s32.totalorder %s231_s2, %s294_s29  ;;  %p300_p10 = scmp.lt.s32.totalorder %s294_s29, %s294_s29 }
  0x1b   :  { %p301_p11 = por %p300_p10, %p299_p9 }
  0x1d   :  { %p302_p12 = pnand %p301_p11, %p295_p8 }
  0xe8   :  { %v103_v4 = vpop.f32.mrb[0].mxu0 }
  0xe9   :  { %v113_v6 = vmul.f32 %v241_v3, %v103_v4  ;;  %v253_v7 = vpop.f32.mrb[1].mxu0 }
  0xeb   :  { %v371_v8 = vadd.f32 %v242_v5, %v113_v6 }
  0xed   :  { %v122_v9 = vand.u32 2139095040, %v371_v8  ;;  %v119_v10 = vand.u32 2147483647, %v371_v8  ;;  %vm121_vm10 = vcmp.lt.s32.totalorder %v371_v8, 0  ;;  %vm211_vm15 = vweird.f32 %v371_v8 }
  0xef   :  { %v123_v11 = vshrl.u32 %v122_v9, 23  ;;  %v126_v13 = vand.u32 8388607, %v119_v10  ;;  %vm120_vm11 = vcmp.le.f32.partialorder %v119_v10, 0.7853982 }
  0xf1   :  { %v243_v12 = vadd.s32 4294967169, %v123_v11  ;;  %v127_v16 = vor.u32 8388608, %v126_v13 }
  0xf3   :  { %v129_v14 = vadd.s32 1, %v243_v12  ;;  %v167_v24 = vshll.u32 %v127_v16, 8 }
  0xf5   :  { %vm130_vm3 = vcmp.gt.s32.totalorder %v129_v14, 0 }
  0xf6   :  { %v131_v15 = vsel %vm130_vm3, %v129_v14, 0 }
  0xf7   :  { %v133_v17 = vand.u32 31, %v131_v15  ;;  %v132_v18 = vshrl.u32 %v131_v15, 5 }
  0xf9   :  { %v134_v19 = vsub.s32 32, %v133_v17  ;;  %v145_v21 = vshll.u32 %v323_v20, %v133_v17  ;;  %v148_v23 = vshll.u32 %v324_v22, %v133_v17  ;;  %v136_v29 = vshll.u32 %v326_v28, %v133_v17 }
  0xfa   :  { %v139_v32 = vshll.u32 %v327_v30, %v133_v17  ;;  %v142_v35 = vshll.u32 %v328_v33, %v133_v17  ;;  %vm154_vm4 = vcmp.lt.s32.totalorder %v132_v18, 4  ;;  %vm151_vm5 = vcmp.lt.s32.totalorder %v132_v18, 1 }
  0xfb   :  { %v146_v25 = vshrl.u32 %v324_v22, %v134_v19  ;;  %v149_v27 = vshrl.u32 %v325_v26, %v134_v19  ;;  %v137_v31 = vshrl.u32 %v327_v30, %v134_v19  ;;  %v140_v34 = vshrl.u32 %v328_v33, %v134_v19 }
  0xfc   :  { %v143_v36 = vshrl.u32 %v323_v20, %v134_v19  ;;  %v135_v40 = vshrl.u32 %v326_v28, %v134_v19  ;;  %vm152_vm6 = vcmp.lt.s32.totalorder %v132_v18, 2  ;;  %vm153_vm7 = vcmp.lt.s32.totalorder %v132_v18, 3 }
  0xfd   :  { %v147_v37 = vor.u32 %v146_v25, %v145_v21  ;;  %v150_v38 = vor.u32 %v149_v27, %v148_v23  ;;  %v138_v39 = vor.u32 %v137_v31, %v136_v29  ;;  %v141_v41 = vor.u32 %v140_v34, %v139_v32 }
  0xfe   :  { %v144_v42 = vor.u32 %v143_v36, %v142_v35 }
  0xff   :  { %v160_v43 = vsel %vm154_vm4, %v147_v37, 920167782  ;;  %v164_v44 = vsel %vm154_vm4, %v150_v38, 1326507024  ;;  %v159_v46 = vsel %vm151_vm5, %v138_v39, %v141_v41  ;;  %v155_v49 = vsel %vm151_vm5, %v135_v40, %v138_v39 }
 0x100   :  { %v156_v45 = vsel %vm154_vm4, %v144_v42, 2102212464  ;;  %v161_v47 = vsel %vm153_vm7, %v144_v42, %v160_v43  ;;  %v163_v48 = vsel %vm151_vm5, %v141_v41, %v144_v42  ;;  %v165_v52 = vsel %vm153_vm7, %v147_v37, %v164_v44 }
 0x101   :  { %v157_v50 = vsel %vm153_vm7, %v141_v41, %v156_v45  ;;  %v162_v51 = vsel %vm152_vm6, %v159_v46, %v161_v47  ;;  %v166_v53 = vsel %vm152_vm6, %v163_v48, %v165_v52 }
 0x102   :  { %v377_v54 = vmul.u32.u64.low %v167_v24, %v162_v51  ;;  %v378_v55 = vmul.u32.u64.high %v167_v24, %v162_v51, %v377_v54  ;;  %v380_v56 = vmul.u32.u64.low %v167_v24, %v166_v53  ;;  %v381_v57 = vmul.u32.u64.high %v167_v24, %v166_v53, %v380_v56 }
 0x103   :  { %v158_v58 = vsel %vm152_vm6, %v155_v49, %v157_v50 }
 0x104   :  { %v177_v59 = vadd.s32 1, %v378_v55  ;;  %v174_v60 = vmul.u32 %v167_v24, %v158_v58  ;;  %vm176_vm8 = vc.u32 %v381_v57, %v377_v54  ;;  %v175_v9 = vadd.s32 %v377_v54, %v381_v57 }
 0x106   :  { %v178_v61 = vsel %vm176_vm8, %v177_v59, %v378_v55 }
 0x107   :  { %v179_v62 = vadd.s32 %v178_v61, %v174_v60 }
 0x109   :  { %v180_v63 = vadd.s32 536870912, %v179_v62 }
 0x10b   :  { %v181_v0 = vshrl.u32 %v180_v63, 30 }
 0x10d   :  { %v182_v1 = vshll.u32 %v181_v0, 30  ;;  %v205_v22 = vsub.s32 4, %v181_v0 }
 0x10f   :  { %v183_v2 = vsub.s32 %v179_v62, %v182_v1  ;;  %v206_v25 = vsel %vm121_vm10, %v205_v22, %v181_v0 }
 0x110   :  { %v208_v27 = vsel %vm120_vm11, 0, %v206_v25 }
 0x111   :  { %v185_v3 = vsub.s32 0, %v183_v2  ;;  %v212_v28 = vadd.s32 3, %v208_v27 }
 0x113   :  { %v244_v4 = vmin.u32 %v185_v3, %v183_v2  ;;  %v213_v29 = vand.u32 3, %v212_v28 }
 0x115   :  { %v187_v5 = vclz %v244_v4  ;;  %vm218_vm12 = vcmp.eq.s32.totalorder %v213_v29, 2  ;;  %vm215_vm13 = vcmp.eq.s32.totalorder %v213_v29, 0  ;;  %vm214_vm14 = vcmp.lt.s32.totalorder %v213_v29, 2 }
 0x117   :  { %v245_v6 = vadd.s32 4294967294, %v187_v5 }
 0x119   :  { %vm246_vm9 = vcmp.lt.s32.totalorder %v245_v6, 0 }
 0x11a   :  { %v190_v7 = vsel %vm246_vm9, 0, %v245_v6 }
 0x11b   :  { %v191_v11 = vsub.s32 32, %v190_v7  ;;  %v195_v12 = vsub.s32 4294967266, %v190_v7  ;;  %v192_v13 = vshll.u32 %v183_v2, %v190_v7 }
 0x11d   :  { %v193_v14 = vshrl.u32 %v175_v9, %v191_v11  ;;  %v196_v15 = vadd.s32 127, %v195_v12 }
 0x11f   :  { %v194_v16 = vor.u32 %v193_v14, %v192_v13  ;;  %v197_v17 = vshll.u32 %v196_v15, 23 }
 0x121   :  { %v198_v18 = vor.u32 4788187, %v197_v17  ;;  %v201_v20 = vcvt.s32.f32 %v194_v16 }
 0x123   :  { %v199_v19 = vand.u32 2147483647, %v198_v18 }
 0x125   :  { %v202_v21 = vmul.f32 %v201_v20, %v199_v19 }
 0x127   :  { %v203_v23 = vxor.u32 2147483648, %v202_v21 }
 0x129   :  { %v204_v24 = vsel %vm121_vm10, %v203_v23, %v202_v21 }
 0x12a   :  { %v207_v26 = vsel %vm120_vm11, %v371_v8, %v204_v24 }
 0x12b   :  { %268 = vcosq.f32 %v207_v26 }
 0x12c   :  { %270 = vsinq.f32 %v207_v26 }
 0x135   :  { %v269_v30 = vpop.eup %268 }
 0x136   :  { %v271_v31 = vpop.eup %270  ;;  %v219_v32 = vxor.u32 2147483648, %v269_v30 }
 0x137   :  { %v216_v33 = vxor.u32 2147483648, %v271_v31 }
 0x138   :  { %v220_v34 = vsel %vm218_vm12, %v219_v32, %v271_v31 }
 0x139   :  { %v217_v10 = vsel %vm215_vm13, %v269_v30, %v216_v33 }
 0x13a   :  { %v221_v35 = vsel %vm214_vm14, %v217_v10, %v220_v34 }
 0x13b   :  { %v222_v36 = vsel %vm211_vm15, nan, %v221_v35 }
 0x13c   :  { %223 = vst [vmem:[#allocation5] sm:$0x3] %v222_v36 }
 0x13d   :  { %305 = shalt.err (!%p302_p12)
}
 0x13e   :  { %s306_s5 = scalar_lea.hbm %s407_s3, 32 }
 0x13f   :  { %p307_p13 = scmp.ne.s32.totalorder %s407_s3, %s306_s5  ;;  %p310_p0 = scmp.lt.u32.totalorder %s306_s5, %s407_s3 }
 0x141   :  { %p312_p1 = pnand %p310_p0, %p307_p13 }
 0x143   :  { %315 = shalt.err (!%p312_p1)
}
 0x144   :  { %233 = dma.vmem_to_hbm [thread:$0]  %s231_s2, 32, %s407_s3, [#allocation4]  }
 0x145   :  { %318 = dma.done.wait [#allocation4], 32  }
 0x146   :  { %319 = vsyncadd [#allocation4], 4294967264 }
 0x147   :  { %237 = vsyncpa [#allocation3], 1 }
 0x148   :  { %238 = vsyncpa [#allocation4], 1 }

</bundles_post_ra>
